<compile_context>
chip_gen: v5e
topology: v5e:2x2
jax: 0.10.0
libtpu: 0.0.40
codegen_flags: <defaults>
</compile_context>

<pallas_src>
import jax
import jax.numpy as jnp
from jax import lax
from jax.experimental import pallas as pl
from jax.experimental.pallas import tpu as pltpu


def _round_up(x, m):
    return (x + m - 1) // m * m


def _make_kernel(has_mask: bool, has_cls: bool):
    """Build the kernel variant for (mask present?, cls present?)."""

    def kernel(*refs):
        it = iter(refs)
        patches_ref = next(it)                    # (1, TN, Kp)  bf16
        w_ref = next(it)                          # (Kp, Ep)     bf16 (VMEM-resident)
        b_ref = next(it)                          # (1, Ep)      f32
        mask_tok_ref = next(it) if has_mask else None   # (1, Ep)  f32
        maskpos_ref = next(it) if has_mask else None    # (1, TN, 1) f32
        cls_ref = next(it) if has_cls else None         # (1, Ep)  f32
        out_ref = next(it)                        # (1, TN, Ep)

        p = patches_ref[0]                                                   # (TN, Kp) bf16
        y = jnp.dot(p, w_ref[...], preferred_element_type=jnp.float32)       # MXU, f32 acc
        y = y + b_ref[...]                                                   # (1, Ep) broadcast

        if has_mask:
            m = maskpos_ref[0]                                               # (TN, 1)
            y = y * (1.0 - m) + mask_tok_ref[...] * m                        # VPU mix

        if has_cls:
            tn = y.shape[0]
            row = lax.broadcasted_iota(jnp.int32, (tn, 1), 0)
            c = jnp.logical_and(row == 0, pl.program_id(1) == 0).astype(jnp.float32)
            y = y * (1.0 - c) + cls_ref[...] * c                             # row 0 -> cls token

        out_ref[0] = y.astype(out_ref.dtype)

    return kernel


def vision_embedding_forward(x, conv_w, conv_b, mask_token, cls_token,
                             masked_position=None, *, patch_size,
                             token_tile=512, out_dtype=None):
    """Equivalent to torchscale VisionEmbedding.forward.

    x:        (B, C, H, W) float32, NCHW
    conv_w:   (E, C, P, P)   PyTorch Conv2d weight layout
    conv_b:   (E,)
    mask_token: (1, 1, E) or None
    cls_token:  (1, 1, E) or None
    masked_position: (B, N) {0,1} or None
    """
    B, C, H, W = x.shape
    P = patch_size
    E = conv_w.shape[0]
    assert H % P == 0 and W % P == 0
    nH, nW = H // P, W // P
    N = nH * nW
    K = C * P * P
    out_dtype = x.dtype if out_dtype is None else out_dtype

    has_cls = cls_token is not None
    has_mask = masked_position is not None
    if has_mask:
        assert mask_token is not None

    lead = 1 if has_cls else 0          # one leading row reserved for the cls token
    T = N + lead                        # output sequence length

    # Padded (lane-dense) sizes; no-ops for real ViT shapes (K, E multiples of 128).
    Kp = _round_up(K, 128)
    Ep = _round_up(E, 128)

    # Token tiling: single full-extent tile when small, 512-token tiles otherwise.
    if T <= token_tile:
        TN = T
        Tpad = T
    else:
        TN = token_tile
        Tpad = _round_up(T, TN)
    nT = Tpad // TN

    # --- glue: unfold NCHW into non-overlapping patches (pure relayout, no compute) ---
    # TODO(synk): the NCHW -> (B, N, K) unfold (reshape+transpose) and the one-time
    #             conv-weight flatten stay in XLA glue; move them upstream (NHWC
    #             activations / pre-flattened weight at init) if they show up in the
    #             profile as standalone HBM passes.
    patches = x.reshape(B, C, nH, P, nW, P)
    patches = patches.transpose(0, 2, 4, 1, 3, 5).reshape(B, N, K)
    pad_tok = Tpad - N - lead
    patches = jnp.pad(patches, ((0, 0), (lead, pad_tok), (0, Kp - K)))
    patches = patches.astype(jnp.bfloat16)                                 # MXU operand

    w_flat = conv_w.reshape(E, K).T                                        # (K, E)
    w_flat = jnp.pad(w_flat, ((0, Kp - K), (0, Ep - E))).astype(jnp.bfloat16)
    b_flat = jnp.pad(conv_b.reshape(1, E).astype(jnp.float32), ((0, 0), (0, Ep - E)))

    inputs = [patches, w_flat, b_flat]
    in_specs = [
        pl.BlockSpec((1, TN, Kp), lambda b, j: (b, j, 0)),   # patch tile
        pl.BlockSpec((Kp, Ep), lambda b, j: (0, 0)),         # weight (resident)
        pl.BlockSpec((1, Ep), lambda b, j: (0, 0)),          # bias
    ]

    if has_mask:
        mask_tok = jnp.pad(mask_token.reshape(1, E).astype(jnp.float32),
                           ((0, 0), (0, Ep - E)))
        mp = masked_position.astype(jnp.float32).reshape(B, N, 1)
        mp = jnp.pad(mp, ((0, 0), (lead, pad_tok), (0, 0)))  # cls/pad rows: not masked
        inputs += [mask_tok, mp]
        in_specs += [pl.BlockSpec((1, Ep), lambda b, j: (0, 0)),
                     pl.BlockSpec((1, TN, 1), lambda b, j: (b, j, 0))]

    if has_cls:
        cls_flat = jnp.pad(cls_token.reshape(1, E).astype(jnp.float32),
                           ((0, 0), (0, Ep - E)))
        inputs += [cls_flat]
        in_specs += [pl.BlockSpec((1, Ep), lambda b, j: (0, 0))]

    kernel = _make_kernel(has_mask, has_cls)

    out = pl.pallas_call(
        kernel,
        out_shape=jax.ShapeDtypeStruct((B, Tpad, Ep), out_dtype),
        grid_spec=pltpu.PrefetchScalarGridSpec(
            num_scalar_prefetch=0,
            grid=(B, nT),
            in_specs=in_specs,
            out_specs=pl.BlockSpec((1, TN, Ep), lambda b, j: (b, j, 0)),
        ),
        compiler_params=pltpu.CompilerParams(
            dimension_semantics=("parallel", "parallel")),
    )(*inputs)

    if Tpad != T or Ep != E:
        out = out[:, :T, :E]     # only when padding was needed (never for real ViT dims)
    return out


if __name__ == "__main__":
    # Small, module-consistent shapes:
    #   img_size=16, patch_size=4, in_chans=4, embed_dim=32, batch=2 -> num_patches=16
    B, C, H, W = 2, 4, 16, 16
    P, E = 4, 32
    N = (H // P) * (W // P)
    K = C * P * P

    key = jax.random.PRNGKey(0)
    k0, k1, k2, k3, k4, k5 = jax.random.split(key, 6)

    x = jax.random.normal(k0, (B, C, H, W), jnp.float32)
    conv_w = 0.02 * jax.random.normal(k1, (E, C, P, P), jnp.float32)
    conv_b = 0.02 * jax.random.normal(k2, (E,), jnp.float32)
    mask_token = 0.02 * jax.random.normal(k3, (1, 1, E), jnp.float32)
    cls_token = 0.02 * jax.random.normal(k4, (1, 1, E), jnp.float32)
    masked_position = (jax.random.uniform(k5, (B, N)) > 0.5).astype(jnp.int32)

    # Full path: mask mix + cls prepend (cls written inside the kernel).
    out = vision_embedding_forward(
        x, conv_w, conv_b, mask_token, cls_token,
        masked_position=masked_position, patch_size=P)
    out = jax.block_until_ready(out)
    assert out.shape == (B, N + 1, E), out.shape

    # Reference (plain f32 JAX). Kernel uses bf16 MXU operands -> loose tolerance.
    patches = x.reshape(B, C, H // P, P, W // P, P).transpose(0, 2, 4, 1, 3, 5).reshape(B, N, K)
    ref = patches @ conv_w.reshape(E, K).T + conv_b[None, None, :]
    wmask = masked_position.astype(jnp.float32)[..., None]
    ref = ref * (1.0 - wmask) + mask_token.reshape(1, 1, E) * wmask
    ref = jnp.concatenate([jnp.broadcast_to(cls_token, (B, 1, E)), ref], axis=1)
    assert jnp.allclose(out, ref, atol=2e-2, rtol=2e-2), \
        float(jnp.max(jnp.abs(out - ref)))

    # Specialized path: no mask, no cls token.
    out2 = vision_embedding_forward(x, conv_w, conv_b, None, None,
                                    masked_position=None, patch_size=P)
    out2 = jax.block_until_ready(out2)
    assert out2.shape == (B, N, E), out2.shape
    ref2 = patches @ conv_w.reshape(E, K).T + conv_b[None, None, :]
    assert jnp.allclose(out2, ref2, atol=2e-2, rtol=2e-2)

    print("KERNEL_OK")
</pallas_src>

<mosaic_0001>
module attributes {stable_mosaic.version = 11 : i64} {
  func.func @kernel(%arg0: i32, %arg1: i32, %arg2: memref<1x17x128xbf16, #tpu.memory_space<vmem>>, %arg3: memref<128x128xbf16, #tpu.memory_space<vmem>>, %arg4: memref<1x128xf32, #tpu.memory_space<vmem>>, %arg5: memref<1x128xf32, #tpu.memory_space<vmem>>, %arg6: memref<1x17x1xf32, #tpu.memory_space<vmem>>, %arg7: memref<1x128xf32, #tpu.memory_space<vmem>>, %arg8: memref<1x17x128xf32, #tpu.memory_space<vmem>>) attributes {dimension_semantics = [#tpu.dimension_semantics<parallel>, #tpu.dimension_semantics<parallel>], iteration_bounds = array<i64: 2, 1>, scalar_prefetch = 0 : i64, scratch_operands = 0 : i64, tpu.core_type = #tpu.core_type<tc>, window_params = [{transform_indices = @transform_0, window_bounds = array<i64: 1, 17, 128>}, {pipeline_mode = #tpu.pipeline_mode<synchronous>, transform_indices = @transform_1, window_bounds = array<i64: 128, 128>}, {pipeline_mode = #tpu.pipeline_mode<synchronous>, transform_indices = @transform_2, window_bounds = array<i64: 1, 128>}, {pipeline_mode = #tpu.pipeline_mode<synchronous>, transform_indices = @transform_3, window_bounds = array<i64: 1, 128>}, {transform_indices = @transform_4, window_bounds = array<i64: 1, 17, 1>}, {pipeline_mode = #tpu.pipeline_mode<synchronous>, transform_indices = @transform_5, window_bounds = array<i64: 1, 128>}, {transform_indices = @transform_6, window_bounds = array<i64: 1, 17, 128>}]} {
    %c0 = arith.constant 0 : index
    %c0_0 = arith.constant 0 : index
    %c0_1 = arith.constant 0 : index
    %0 = vector.load %arg2[%c0, %c0_0, %c0_1] : memref<1x17x128xbf16, #tpu.memory_space<vmem>>, vector<1x17x128xbf16>
    %1 = vector.shape_cast %0 : vector<1x17x128xbf16> to vector<17x128xbf16>
    %c0_2 = arith.constant 0 : index
    %c0_3 = arith.constant 0 : index
    %2 = vector.load %arg3[%c0_2, %c0_3] : memref<128x128xbf16, #tpu.memory_space<vmem>>, vector<128x128xbf16>
    %cst = arith.constant dense<0.000000e+00> : vector<17x128xf32>
    %3 = tpu.matmul %1, %2, %cst {dimension_numbers = #tpu.dot_dimension_numbers<[1], [0], [0], [1], [0, 0, 1, 1], [], []>} : vector<17x128xbf16>, vector<128x128xbf16>, vector<17x128xf32> -> vector<17x128xf32>
    %c0_4 = arith.constant 0 : index
    %c0_5 = arith.constant 0 : index
    %4 = vector.load %arg4[%c0_4, %c0_5] : memref<1x128xf32, #tpu.memory_space<vmem>>, vector<1x128xf32>
    %5 = vector.broadcast %4 : vector<1x128xf32> to vector<17x128xf32>
    %6 = arith.addf %3, %5 : vector<17x128xf32>
    %c0_6 = arith.constant 0 : index
    %c0_7 = arith.constant 0 : index
    %c0_8 = arith.constant 0 : index
    %7 = vector.load %arg6[%c0_6, %c0_7, %c0_8] : memref<1x17x1xf32, #tpu.memory_space<vmem>>, vector<1x17x1xf32>
    %8 = vector.shape_cast %7 : vector<1x17x1xf32> to vector<17x1xf32>
    %cst_9 = arith.constant 1.000000e+00 : f32
    %9 = vector.broadcast %cst_9 : f32 to vector<17x1xf32>
    %10 = arith.subf %9, %8 : vector<17x1xf32>
    %11 = vector.broadcast %10 : vector<17x1xf32> to vector<17x128xf32>
    %12 = arith.mulf %6, %11 : vector<17x128xf32>
    %c0_10 = arith.constant 0 : index
    %c0_11 = arith.constant 0 : index
    %13 = vector.load %arg5[%c0_10, %c0_11] : memref<1x128xf32, #tpu.memory_space<vmem>>, vector<1x128xf32>
    %14 = vector.broadcast %13 : vector<1x128xf32> to vector<17x128xf32>
    %15 = vector.broadcast %8 : vector<17x1xf32> to vector<17x128xf32>
    %16 = arith.mulf %14, %15 : vector<17x128xf32>
    %17 = arith.addf %12, %16 : vector<17x128xf32>
    %18 = tpu.iota {dimensions = array<i32: 0>} : vector<17x1xi32>
    %c0_i32 = arith.constant 0 : i32
    %19 = vector.broadcast %c0_i32 : i32 to vector<17x1xi32>
    %20 = arith.cmpi eq, %18, %19 : vector<17x1xi32>
    %c0_i32_12 = arith.constant 0 : i32
    %21 = arith.cmpi eq, %arg1, %c0_i32_12 : i32
    %22 = vector.broadcast %21 : i1 to vector<17x1xi1>
    %23 = arith.andi %20, %22 : vector<17x1xi1>
    %24 = arith.extui %23 : vector<17x1xi1> to vector<17x1xi32>
    %25 = arith.sitofp %24 : vector<17x1xi32> to vector<17x1xf32>
    %cst_13 = arith.constant 1.000000e+00 : f32
    %26 = vector.broadcast %cst_13 : f32 to vector<17x1xf32>
    %27 = arith.subf %26, %25 : vector<17x1xf32>
    %28 = vector.broadcast %27 : vector<17x1xf32> to vector<17x128xf32>
    %29 = arith.mulf %17, %28 : vector<17x128xf32>
    %c0_14 = arith.constant 0 : index
    %c0_15 = arith.constant 0 : index
    %30 = vector.load %arg7[%c0_14, %c0_15] : memref<1x128xf32, #tpu.memory_space<vmem>>, vector<1x128xf32>
    %31 = vector.broadcast %30 : vector<1x128xf32> to vector<17x128xf32>
    %32 = vector.broadcast %25 : vector<17x1xf32> to vector<17x128xf32>
    %33 = arith.mulf %31, %32 : vector<17x128xf32>
    %34 = arith.addf %29, %33 : vector<17x128xf32>
    %c0_16 = arith.constant 0 : index
    %c0_17 = arith.constant 0 : index
    %c0_18 = arith.constant 0 : index
    %35 = vector.load %arg8[%c0_16, %c0_17, %c0_18] : memref<1x17x128xf32, #tpu.memory_space<vmem>>, vector<1x17x128xf32>
    %36 = vector.shape_cast %35 : vector<1x17x128xf32> to vector<17x128xf32>
    %37 = vector.shape_cast %34 : vector<17x128xf32> to vector<1x17x128xf32>
    tpu.vector_store %arg8[%c0_16, %c0_17, %c0_18], %37 {strides = array<i32>} : memref<1x17x128xf32, #tpu.memory_space<vmem>>, vector<1x17x128xf32>,
    return
  }
  func.func @transform_0(%arg0: i32, %arg1: i32) -> (i32, i32, i32) {
    %c0_i32 = arith.constant 0 : i32
    %c0_i32_0 = arith.constant 0 : i32
    return %arg0, %arg1, %c0_i32 : i32, i32, i32
  }
  func.func @transform_1(%arg0: i32, %arg1: i32) -> (i32, i32) {
    %c0_i32 = arith.constant 0 : i32
    %c0_i32_0 = arith.constant 0 : i32
    %c0_i32_1 = arith.constant 0 : i32
    return %c0_i32, %c0_i32_0 : i32, i32
  }
  func.func @transform_2(%arg0: i32, %arg1: i32) -> (i32, i32) {
    %c0_i32 = arith.constant 0 : i32
    %c0_i32_0 = arith.constant 0 : i32
    %c0_i32_1 = arith.constant 0 : i32
    return %c0_i32, %c0_i32_0 : i32, i32
  }
  func.func @transform_3(%arg0: i32, %arg1: i32) -> (i32, i32) {
    %c0_i32 = arith.constant 0 : i32
    %c0_i32_0 = arith.constant 0 : i32
    %c0_i32_1 = arith.constant 0 : i32
    return %c0_i32, %c0_i32_0 : i32, i32
  }
  func.func @transform_4(%arg0: i32, %arg1: i32) -> (i32, i32, i32) {
    %c0_i32 = arith.constant 0 : i32
    %c0_i32_0 = arith.constant 0 : i32
    return %arg0, %arg1, %c0_i32 : i32, i32, i32
  }
  func.func @transform_5(%arg0: i32, %arg1: i32) -> (i32, i32) {
    %c0_i32 = arith.constant 0 : i32
    %c0_i32_0 = arith.constant 0 : i32
    %c0_i32_1 = arith.constant 0 : i32
    return %c0_i32, %c0_i32_0 : i32, i32
  }
  func.func @transform_6(%arg0: i32, %arg1: i32) -> (i32, i32, i32) {
    %c0_i32 = arith.constant 0 : i32
    %c0_i32_0 = arith.constant 0 : i32
    return %arg0, %arg1, %c0_i32 : i32, i32, i32
  }
}

</mosaic_0001>

<bundles_post_ra>
// kernel: tpu_custom_call.1
= control target key start
LH: loop header
LB: loop body
LE: loop exit
PB: predicated region body
PF: predicated region fallthrough
CT: control target
= control target key end

     0   :  { %s778_s21 = smov 0   ;;  %s780_s22 = smov 0   ;;  %s855_s0 = inlined_call_operand.vmem [shape: bf16[2,17,128], index: 0, kind: input, shape index: {}]   ;;  %s856_s1 = inlined_call_operand.vmem [shape: bf16[128,128], index: 1, kind: input, shape index: {}]   ;;  %s857_s2 = inlined_call_operand.vmem [shape: f32[1,128], index: 2, kind: input, shape index: {}]   ;;  %s858_s3 = inlined_call_operand.vmem [shape: f32[1,128], index: 3, kind: input, shape index: {}]   ;;  %s859_s4 = inlined_call_operand.vmem [shape: f32[2,17,1], index: 4, kind: input, shape index: {}]   ;;  %s860_s5 = inlined_call_operand.vmem [shape: f32[1,128], index: 5, kind: input, shape index: {}]   ;;  %s861_s6 = inlined_call_operand.vmem [shape: f32[2,17,128], index: 6, kind: output, shape index: {}]  }
   0x1   :  { %s782_s23 = smov 0  }
   0x2 LB: > { %s28_s24 = sadd.s32 1, %s735_s22  ;;  %p623_p0 = scmp.ge.s32.totalorder %s739_s23, 1  ;;  %s739_s23 = sphi %s782_s23, %s16_s23   ;;  %s735_s22 = sphi %s780_s22, %s863_s22   ;;  %s731_s21 = sphi %s778_s21, %s862_s21  }
   0x3   : > { %p30_p1 = scmp.ge.s32.totalorder %s28_s24, 2  ;;  %p250_p2 = scmp.lt.s32.totalorder %s739_s23, 3 }
   0x5   : > { %s865_s24 = smov (%p30_p1, %s28_s24), 0  ;;  %p251_p3 = pnand %p623_p0, %p250_p2 }
   0x6   : > { %p298_p4 = scmp.lt.s32.totalorder (!%p251_p3), %s731_s21, 1 }
   0x7   : > { %254 = sbr.rel (%p251_p3) target bundleno = 187 (0xbb), region = 44 }
   0xc   : > { %v674_v0 = vld [vmem:[%s856_s1 + $0x38] sm:$0xff]  ;;  %v673_v1 = vld [vmem:[%s856_s1 + $0x30] sm:$0xff]  ;;  %s867_s21 = smov (!%p298_p4, %s731_s21), 1  ;;  %v741_v2 = vmov 0   ;;  %v672_v3 = vld [vmem:[%s856_s1 + $0x28] sm:$0xff]  ;;  %v475_v20 = vlaneseq  ;;  %v742_v28 = vmov 0.0  }
   0xd   : > { %408 = vmatpush.bf16.msra.mxu0 %v674_v0  ;;  %675 = vmatpush.bf16.msra.mxu1 %v674_v0  ;;  %s684_s29 = smul.u32 24, %s867_s21  ;;  %v671_v8 = vld [vmem:[%s856_s1 + $0x20] sm:$0xff]  ;;  %v670_v10 = vld [vmem:[%s856_s1 + $0x18] sm:$0xff]  ;;  %v669_v12 = vld [vmem:[%s856_s1 + $0x10] sm:$0xff] }
   0xe   : > { %711 = vset.pattern.permute.xlu0 %v741_v2  ;;  %712 = vset.pattern.permute.xlu1 %v741_v2  ;;  %s683_s15 = smul.u32 12, %s867_s21  ;;  %v668_v13 = vld [vmem:[%s856_s1 + $0x8] sm:$0xff]  ;;  %v667_v16 = vld [vmem:[%s856_s1] sm:$0xff]  ;;  %v476_v23 = vshrl.u32 %v475_v20, 7 }
   0xf   : > { %713 = vset.pattern.permute.xlu2 %v741_v2  ;;  %s315_s10 = scalar_lea.vmem %s859_s4, %s684_s29  ;;  %v715_v24 = vld [vmem:[%s857_s2] ss:$0 sm:$0xff]  ;;  %s325_s14 = scalar_lea.vmem %s861_s6, %s684_s29 }
  0x10   : > { %v426_v4 = vld [vmem:[%s315_s10] sm:$0xff]  ;;  %v427_v5 = vld [vmem:[%s315_s10 + $0x8] sm:$0xff]  ;;  %v428_v9 = vld [vmem:[%s315_s10 + $0x10] sm:$0x1]  ;;  %s305_s20 = scalar_lea.vmem %s855_s0, %s683_s15  ;;  %vm479_vm0 = vcmp.eq.s32.totalorder %v476_v23, 0 }
  0x11   : > { %409 = vmatpush.bf16.msra.mxu0 %v673_v1  ;;  %676 = vmatpush.bf16.msra.mxu1 %v673_v1  ;;  %v429_v6 = vsub.f32 1.0, %v426_v4  ;;  %v430_v7 = vsub.f32 1.0, %v427_v5  ;;  %v431_v11 = vsub.f32 1.0, %v428_v9  ;;  %v329_v14 = vld [vmem:[%s305_s20 + $0x8] sm:$0x1]  ;;  %v666_v17 = vld [vmem:[%s305_s20] sm:$0xff] }
  0x12   : > { %461 = vperm.xlu2 %713, %v427_v5   ;;  %v355_v15 = vunpack.c.l.b16 %v329_v14  ;;  %v714_v26 = vld [vmem:[%s858_s3] ss:$0 sm:$0xff]  ;;  %v663_v29 = vsel %vm479_vm0, 1.0, %v742_v28 }
  0x13   : > { %434 = vperm.xlu0 %711, %v429_v6   ;;  %439 = vperm.xlu1 %712, %v430_v7   ;;  %v716_v30 = vld [vmem:[%s860_s5] ss:$0 sm:$0xff]  ;;  %v495_v37 = vsub.f32 1.0, %v663_v29 }
  0x14   : > { %v357_v18 = vpack.c.b16 %v355_v15, %v355_v15  ;;  %v506_v40 = vmul.f32 0.0, %v716_v30  ;;  %v505_v43 = vmul.f32 %v716_v30, %v663_v29 }
  0x15   : > { %410 = vmatpush.bf16.msra.mxu0 %v672_v3  ;;  %677 = vmatpush.bf16.msra.mxu1 %v672_v3 }
  0x19   : > { %411 = vmatpush.bf16.msra.mxu0 %v671_v8  ;;  %678 = vmatpush.bf16.msra.mxu1 %v671_v8 }
  0x1a   : > { %466 = vperm.xlu2 %713, %v428_v9  }
  0x1b   : > { %456 = vperm.xlu0 %711, %v426_v4   ;;  %444 = vperm.xlu1 %712, %v431_v11  }
  0x1d   : > { %412 = vmatpush.bf16.msra.mxu0 %v670_v10  ;;  %679 = vmatpush.bf16.msra.mxu1 %v670_v10 }
  0x21   : > { %413 = vmatpush.bf16.msra.mxu0 %v669_v12  ;;  %680 = vmatpush.bf16.msra.mxu1 %v669_v12 }
  0x25   : > { %414 = vmatpush.bf16.msra.mxu0 %v668_v13  ;;  %681 = vmatpush.bf16.msra.mxu1 %v668_v13 }
  0x29   : > { %415 = vmatpush.bf16.msra.mxu0 %v667_v16  ;;  %682 = vmatpush.bf16.msra.mxu1 %v667_v16 }
  0x2c   : > { %416 = vmatmul.bf16.vlgmr.msra.gmra.mxu0 %v666_v17  ;;  %421 = vmatmul.bf16.vlgmr.msra.gmra.mxu1 %v357_v18 }
  0x6c   : > { %v462_v19 = vpop.permute.xlu2 %461 }
  0x6d   : > { %v470_v51 = vmul.f32 %v714_v26, %v462_v19 }
  0x74   : > { %v467_v25 = vpop.permute.xlu2 %466 }
  0x75   : > { %v471_v36 = vmul.f32 %v714_v26, %v467_v25 }
  0x85   : > { %v435_v21 = vpop.permute.xlu0 %434  ;;  %v440_v22 = vpop.permute.xlu1 %439 }
  0x8d   : > { %v457_v27 = vpop.permute.xlu0 %456  ;;  %v445_v31 = vpop.permute.xlu1 %444 }
  0x8e   : > { %v469_v38 = vmul.f32 %v714_v26, %v457_v27 }
  0xa9   : > { %v417_v32 = vpop.f32.mrf.mxu0  ;;  %v422_v33 = vpop.f32.mrf.mxu1 }
  0xaa   : > { %v418_v34 = vadd.f32 %v715_v24, %v417_v32  ;;  %v423_v35 = vadd.f32 %v715_v24, %v422_v33 }
  0xac   : > { %v447_v39 = vmul.f32 %v435_v21, %v418_v34  ;;  %v449_v41 = vmul.f32 %v445_v31, %v423_v35 }
  0xae   : > { %v472_v42 = vadd.f32 %v469_v38, %v447_v39  ;;  %v474_v44 = vadd.f32 %v471_v36, %v449_v41 }
  0xb0   : > { %v498_v45 = vmul.f32 %v495_v37, %v472_v42  ;;  %v510_v46 = vadd.f32 %v506_v40, %v474_v44 }
  0xb1   : > { %v419_v47 = vpop.f32.mrf.mxu0  ;;  %v424_v48 = vpop.f32.mrf.mxu1 }
  0xb2   : > { %v508_v49 = vadd.f32 %v505_v43, %v498_v45  ;;  %513 = vst [vmem:[%s325_s14 + $0x10] sm:$0x1] %v510_v46  ;;  %v420_v50 = vadd.f32 %v715_v24, %v419_v47 }
  0xb4   : > { %511 = vst [vmem:[%s325_s14] sm:$0xff] %v508_v49  ;;  %v448_v52 = vmul.f32 %v440_v22, %v420_v50 }
  0xb6   : > { %v473_v53 = vadd.f32 %v470_v51, %v448_v52 }
  0xb8   : > { %v509_v54 = vadd.f32 %v506_v40, %v473_v53 }
  0xba   : > { %512 = vst [vmem:[%s325_s14 + $0x8] sm:$0xff] %v509_v54 }
  0xbb PF: > { %s16_s23 = sadd.s32 1, %s739_s23   ;;  %s862_s21 = smov %s735_s22 }
  0xbc   : > { %p13_p5 = scmp.ge.s32.totalorder %s16_s23, 4   ;;  %s863_s22 = smov %s865_s24 }
  0xbe   :  { %15 = sbr.rel (!%p13_p5) target bundleno = 2 (0x2), region = 77 }

</bundles_post_ra>
